<compile_context>
chip_gen: v7x
topology: tpu7x:2x2x1
jax: 0.10.0
libtpu: 0.0.40
codegen_flags: <defaults>
</compile_context>

<pallas_src>
import functools

import jax
import jax.numpy as jnp
from jax.experimental import pallas as pl
from jax.experimental.pallas import tpu as pltpu


def _linear_kernel(x_ref, w_ref, b_ref, o_ref):
    # x_ref: (TB, 64)   w_ref: (64, 64) in [in, out] layout
    # b_ref: (1, 64)    o_ref: (TB, 64)
    # Contraction is on w's rows -> plain jnp.dot, no in-kernel transpose.
    acc = jnp.dot(x_ref[...], w_ref[...], preferred_element_type=jnp.float32)
    o_ref[...] = (acc + b_ref[...]).astype(o_ref.dtype)


@functools.partial(jax.jit, static_argnames=("batch_tile", "grid_threshold"))
def linear_pallas(x, weight, bias, *, batch_tile=128, grid_threshold=256):
    """y = x @ weight.T + bias  (PyTorch nn.Linear semantics).

    x:      (B, 64)  float32
    weight: (64, 64) float32  (out_features, in_features) -- PyTorch layout
    bias:   (64,)    float32
    """
    B, K = x.shape
    N = weight.shape[0]

    # One-time tiny layout fixes, fused under jit:
    w_t = weight.T            # [in, out] so the kernel contracts on RHS rows
    b2 = bias.reshape(1, N)   # 2-D for TPU-friendly broadcast

    cost = pl.CostEstimate(
        flops=2 * B * K * N,
        bytes_accessed=(B * K + K * N + N + B * N) * 4,
        transcendentals=0,
    )

    if B < grid_threshold or (B % batch_tile) != 0:
        # Gridless: everything fits in VMEM; single DMA set, single MXU call.
        # TODO(synk): ragged large B (not a multiple of batch_tile) also lands
        # here; add a padded/cdiv grid if such shapes ever show up hot.
        return pl.pallas_call(
            _linear_kernel,
            out_shape=jax.ShapeDtypeStruct((B, N), x.dtype),
            in_specs=[
                pl.BlockSpec(memory_space=pltpu.MemorySpace.VMEM),
                pl.BlockSpec(memory_space=pltpu.MemorySpace.VMEM),
                pl.BlockSpec(memory_space=pltpu.MemorySpace.VMEM),
            ],
            out_specs=pl.BlockSpec(memory_space=pltpu.MemorySpace.VMEM),
            cost_estimate=cost,
        )(x, w_t, b2)

    # Batch-tiled path: 1-D parallel grid over rows, weight/bias resident.
    grid = (B // batch_tile,)
    return pl.pallas_call(
        _linear_kernel,
        out_shape=jax.ShapeDtypeStruct((B, N), x.dtype),
        grid=grid,
        in_specs=[
            pl.BlockSpec((batch_tile, K), lambda i: (i, 0)),
            pl.BlockSpec((K, N), lambda i: (0, 0)),   # weight: DMA'd once, stays resident
            pl.BlockSpec((1, N), lambda i: (0, 0)),   # bias:   DMA'd once, stays resident
        ],
        out_specs=pl.BlockSpec((batch_tile, N), lambda i: (i, 0)),
        compiler_params=pltpu.CompilerParams(
            dimension_semantics=("parallel",),        # shard batch across v7x's 2 TCs
        ),
        cost_estimate=cost,
    )(x, w_t, b2)


if __name__ == "__main__":
    key = jax.random.PRNGKey(0)
    k_x, k_w, k_b, k_other, k_xl = jax.random.split(key, 5)

    B, IN, OUT = 8, 64, 64

    # Deterministic parameter init (nn.Linear uses U(-1/sqrt(in), 1/sqrt(in)))
    bound = 1.0 / jnp.sqrt(jnp.float32(IN))
    weight = jax.random.uniform(k_w, (OUT, IN), jnp.float32, -bound, bound)
    bias = jax.random.uniform(k_b, (OUT,), jnp.float32, -bound, bound)
    # self.other is an unused parameter in forward; initialized for completeness.
    other = jax.random.normal(k_other, (64, 64), jnp.float32)

    # --- Small batch: exercises the gridless path (matches the module spec) ---
    x1 = jax.random.normal(k_x, (B, IN), jnp.float32)
    v1 = jax.block_until_ready(linear_pallas(x1, weight, bias))
    ref = x1 @ weight.T + bias
    assert jnp.allclose(v1, ref, atol=1e-5, rtol=1e-5), "gridless path mismatch"

    # --- Larger batch: exercises the batch-tiled parallel-grid path ---
    BL = 512
    xl = jax.random.normal(k_xl, (BL, IN), jnp.float32)
    vl = jax.block_until_ready(linear_pallas(xl, weight, bias))
    refl = xl @ weight.T + bias
    assert jnp.allclose(vl, refl, atol=1e-5, rtol=1e-5), "batch-tiled path mismatch"

    print("KERNEL_OK")
</pallas_src>

<mosaic_0001>
module attributes {stable_mosaic.version = 11 : i64} {
  func.func @_linear_kernel(%arg0: memref<8x64xf32, #tpu.memory_space<vmem>>, %arg1: memref<64x64xf32, #tpu.memory_space<vmem>>, %arg2: memref<1x64xf32, #tpu.memory_space<vmem>>, %arg3: memref<8x64xf32, #tpu.memory_space<vmem>>) attributes {dimension_semantics = [], scalar_prefetch = 0 : i64, scratch_operands = 0 : i64, tpu.core_type = #tpu.core_type<tc>} {
    %c0 = arith.constant 0 : index
    %c0_0 = arith.constant 0 : index
    %0 = vector.load %arg0[%c0, %c0_0] : memref<8x64xf32, #tpu.memory_space<vmem>>, vector<8x64xf32>
    %c0_1 = arith.constant 0 : index
    %c0_2 = arith.constant 0 : index
    %1 = vector.load %arg1[%c0_1, %c0_2] : memref<64x64xf32, #tpu.memory_space<vmem>>, vector<64x64xf32>
    %cst = arith.constant dense<0.000000e+00> : vector<8x64xf32>
    %2 = tpu.matmul %0, %1, %cst {dimension_numbers = #tpu.dot_dimension_numbers<[1], [0], [0], [1], [0, 0, 1, 1], [], []>} : vector<8x64xf32>, vector<64x64xf32>, vector<8x64xf32> -> vector<8x64xf32>
    %c0_3 = arith.constant 0 : index
    %c0_4 = arith.constant 0 : index
    %3 = vector.load %arg2[%c0_3, %c0_4] : memref<1x64xf32, #tpu.memory_space<vmem>>, vector<1x64xf32>
    %4 = vector.broadcast %3 : vector<1x64xf32> to vector<8x64xf32>
    %5 = arith.addf %2, %4 : vector<8x64xf32>
    %c0_5 = arith.constant 0 : index
    %c0_6 = arith.constant 0 : index
    %6 = vector.load %arg3[%c0_5, %c0_6] : memref<8x64xf32, #tpu.memory_space<vmem>>, vector<8x64xf32>
    tpu.vector_store %arg3[%c0_5, %c0_6], %5 {strides = array<i32>} : memref<8x64xf32, #tpu.memory_space<vmem>>, vector<8x64xf32>,
    return
  }
}

</mosaic_0001>

<bundles_post_ra>
// kernel: linear_pallas.1
= control target key start
LH: loop header
LB: loop body
LE: loop exit
PB: predicated region body
PF: predicated region fallthrough
CT: control target
= control target key end

     0   :  { %v190_v3 = vmov 0.0|0.0   ;;  %vm191_vm0 = vmmov 0   ;;  %v192_v6 = vmov 0.0   ;;  %s256_s0 = inlined_call_operand.vmem [shape: f32[8,64], index: 0, kind: input, shape index: {}]   ;;  %s257_s1 = inlined_call_operand.vmem [shape: f32[64,64], index: 1, kind: input, shape index: {}]   ;;  %s258_s2 = inlined_call_operand.vmem [shape: f32[1,64], index: 2, kind: input, shape index: {}]   ;;  %s259_s3 = inlined_call_operand.hbm [shape: f32[8,64], index: 3, kind: output, shape index: {}]  }
   0x1   :  { %v16_v0 = vld [vmem:[%s257_s1] sm:$0xff]  ;;  %v17_v1 = vld [vmem:[%s257_s1 + $0x8] sm:$0xff]  ;;  %v18_v2 = vld [vmem:[%s257_s1 + $0x10] sm:$0xff]  ;;  %150 = vmatprep.subr.bf16.mxu0 %v190_v3  ;;  %147 = vmatprep.mubr.msk.f32.mxu0 %vm191_vm0, %v192_v6 }
   0x2   :  { %v151_v4 = vpack.c.bf16 %v17_v1, %v16_v0  ;;  %v19_v5 = vld [vmem:[%s257_s1 + $0x18] sm:$0xff] }
   0x3   :  { %v154_v7 = vpack.c.bf16 %v19_v5, %v18_v2 }
   0x4   :  { %152 = vmatpush3.bf16.msra.mxu0 %v151_v4 }
   0x5   :  { %8 = vsyncpa [#allocation3], 0  ;;  %153 = vmatprep.subr.bf16.mxu0 %v190_v3  ;;  %v20_v8 = vld [vmem:[%s257_s1 + $0x20] sm:$0xff]  ;;  %v21_v9 = vld [vmem:[%s257_s1 + $0x28] sm:$0xff]  ;;  %vm31_vm1 = vcmask 523264   ;;  %s193_s5 = smov [#allocation2]  }
   0x6   :  { %v157_v10 = vpack.c.bf16 %v21_v9, %v20_v8  ;;  %v22_v11 = vld [vmem:[%s257_s1 + $0x30] sm:$0xff]  ;;  %v23_v12 = vld [vmem:[%s257_s1 + $0x38] sm:$0xff]  ;;  %v15_v14 = vld [vmem:[%s256_s0] sm:$0xff]  ;;  %s112_s6 = sshll.u32 %s193_s5, 4  ;;  %s113_s6 = int_to_ptr.vmem [resolvable:$true] %s112_s6 }
   0x7   :  { %v160_v13 = vpack.c.bf16 %v23_v12, %v22_v11  ;;  %v120_v15 = vld [vmem:[%s258_s2] ss:$0 sm:$0xff]  ;;  %s166_s1 = scalar_lea.vmem %s113_s6, 128  ;;  %p171_p1 = scmp.lt.s32.totalorder %s113_s6, %s113_s6 }
   0x8   :  { %155 = vmatpush3.bf16.msra.mxu0 %v154_v7  ;;  %p167_p0 = scmp.ne.s32.totalorder %s113_s6, %s166_s1  ;;  %p172_p2 = scmp.lt.s32.totalorder %s166_s1, %s166_s1 }
   0x9   :  { %156 = vmatprep.subr.bf16.mxu0 %v190_v3 }
   0xa   :  { %p173_p3 = por %p172_p2, %p171_p1 }
   0xc   :  { %158 = vmatpush3.bf16.msra.mxu0 %v157_v10  ;;  %p174_p4 = pnand %p173_p3, %p167_p0 }
   0xd   :  { %159 = vmatprep.subr.bf16.mxu0 %v190_v3 }
  0x10   :  { %161 = vmatpush3.bf16.msra.mxu0 %v160_v13 }
  0x13   :  { %148 = vmatmul.mubr.msk.f32.vlgmr.msra.gmra.mrb[0].mxu0 %vm31_vm1, %v15_v14 }
  0xe6   :  { %v101_v16 = vpop.f32.mrb[0].mxu0 }
  0xe7   :  { %v102_v17 = vadd.f32 %v120_v15, %v101_v16  ;;  %v149_v18 = vpop.f32.mrb[1].mxu0 }
  0xe9   :  { %105 = vst.msk [vmem:[#allocation2] sm:$0xff] %vm31_vm1, %v102_v17 }
  0xea   :  { %177 = shalt.err (!%p174_p4)
}
  0xeb   :  { %s178_s8 = scalar_lea.hbm %s259_s3, 128 }
  0xec   :  { %p179_p5 = scmp.ne.s32.totalorder %s259_s3, %s178_s8  ;;  %p182_p6 = scmp.lt.u32.totalorder %s178_s8, %s259_s3 }
  0xee   :  { %p184_p7 = pnand %p182_p6, %p179_p5 }
  0xf0   :  { %187 = shalt.err (!%p184_p7)
}
  0xf1   :  { %115 = dma.vmem_to_hbm [thread:$0]  %s113_s6, 128, %s259_s3, [#allocation3]  }
  0xf2   :  { %188 = dma.done.wait [#allocation3], 128  }
  0xf3   :  { %189 = vsyncadd [#allocation3], 4294967168 }
  0xf4   :  { %119 = vsyncpa [#allocation3], 1 }

</bundles_post_ra>
